<compile_context>
chip_gen: v6e
topology: v6e:2x2x1
jax: 0.10.0
libtpu: 0.0.40
codegen_flags: <defaults>
</compile_context>

<pallas_src>
import functools

import jax
import jax.numpy as jnp
from jax.experimental import pallas as pl
from jax.experimental.pallas import tpu as pltpu


def _attn_kernel(q_ref, k_ref, v_ref, wt_ref, b_ref, sf_ref, o_ref, *,
                 dropout_p, seed):
    # dropout_p is a Python-time constant; p >= 1 drops every probability so
    # the whole pipeline collapses to a memset -> skip all compute.
    if dropout_p >= 1.0:
        o_ref[...] = jnp.zeros_like(o_ref)
        return

    Bt, Sq, Dq = q_ref.shape
    _, Sk, _ = k_ref.shape

    wt = wt_ref[...]                     # (Dq, Dk) pre-transposed Linear weight
    b = b_ref[...]                       # (1, Dk)

    # Fused shared projection: stack the q and k rows of all Bt batches into a
    # single slab and run ONE matmul on the MXU (instead of 2*Bt tiny ones).
    q_rows = q_ref[...].reshape(Bt * Sq, Dq)
    k_rows = k_ref[...].reshape(Bt * Sk, Dq)
    slab = jnp.concatenate([q_rows, k_rows], axis=0)            # (Bt*(Sq+Sk), Dq)
    proj = jnp.dot(slab, wt, preferred_element_type=jnp.float32) + b
    qp = proj[:Bt * Sq].reshape(Bt, Sq, -1)                     # (Bt, Sq, Dk)
    kp = proj[Bt * Sq:].reshape(Bt, Sk, -1)                     # (Bt, Sk, Dk)

    # Fold the per-key-position scale into kp (sf passed as an (Sk, 1) column
    # from the wrapper, so no in-kernel relayout).
    kp = kp * sf_ref[...][None, :, :]

    # qk contracts the last dims of both operands -> no explicit kp.T.
    s = jnp.einsum("bqd,bkd->bqk", qp, kp,
                   preferred_element_type=jnp.float32)          # (Bt, Sq, Sk)

    # Numerically stable softmax; reciprocal goes to the otherwise-idle EUP.
    m = jnp.max(s, axis=-1, keepdims=True)
    e = jnp.exp(s - m)
    probs = e * pl.reciprocal(jnp.sum(e, axis=-1, keepdims=True), approx=True)

    if dropout_p > 0.0:
        # One seed per grid step covers all Bt batches of this block.
        pltpu.prng_seed(seed + pl.program_id(0))
        bits = pltpu.bitcast(pltpu.prng_random_bits(probs.shape), jnp.uint32)
        # Direct integer threshold: P(bits >= T) = 1 - dropout_p.
        threshold = min(int(dropout_p * float(2 ** 32)), 2 ** 32 - 1)
        keep = bits >= jnp.uint32(threshold)
        probs = jnp.where(keep, probs * (1.0 / (1.0 - dropout_p)), 0.0)

    # NOTE: at realistic (hundreds-sized) Sq/Sk/D, cast matmul operands to
    # bf16 (keeping preferred_element_type=f32) for full MXU rate; at these
    # toy shapes f32 is fine.
    o_ref[...] = jnp.einsum("bqk,bkd->bqd", probs, v_ref[...],
                            preferred_element_type=jnp.float32)


def attention(query, key, value, scale_factor, weight, bias, dropout_p,
              seed=0):
    B, Sq, Dq = query.shape
    _, Sk, _ = key.shape
    Dk = weight.shape[0]
    Dv = value.shape[-1]

    # Hoist layout work out of the hot path (trace-time, runs once):
    w_t = jnp.asarray(weight).T            # (Dq, Dk)
    bias2d = bias.reshape(1, Dk)
    sf_col = scale_factor.reshape(Sk, 1)   # per-key-position scale as a column

    # Batch tiling: amortize the ~0.35 us/step grid overhead, but keep >= 2
    # grid steps when possible so v7x megacore can shard across its 2 TCs.
    if B >= 2 and B % 2 == 0:
        block_b = B // 2
    else:
        block_b = B
    grid_b = B // block_b

    kernel = functools.partial(_attn_kernel,
                               dropout_p=float(dropout_p), seed=int(seed))

    return pl.pallas_call(
        kernel,
        out_shape=jax.ShapeDtypeStruct((B, Sq, Dv), jnp.float32),
        grid_spec=pltpu.PrefetchScalarGridSpec(
            num_scalar_prefetch=0,
            grid=(grid_b,),
            in_specs=[
                pl.BlockSpec((block_b, Sq, Dq), lambda b: (b, 0, 0)),  # query
                pl.BlockSpec((block_b, Sk, Dq), lambda b: (b, 0, 0)),  # key
                pl.BlockSpec((block_b, Sk, Dv), lambda b: (b, 0, 0)),  # value
                pl.BlockSpec((Dq, Dk), lambda b: (0, 0)),              # W^T
                pl.BlockSpec((1, Dk), lambda b: (0, 0)),               # bias
                pl.BlockSpec((Sk, 1), lambda b: (0, 0)),               # scale col
            ],
            out_specs=pl.BlockSpec((block_b, Sq, Dv), lambda b: (b, 0, 0)),
        ),
        compiler_params=pltpu.CompilerParams(
            dimension_semantics=("parallel",)),
    )(query, key, value, w_t, bias2d, sf_col)


def attention_ref(query, key, value, scale_factor, weight, bias, dropout_p):
    # Pure-JAX reference (dropout only checked for p==0 / p==1 since it is
    # stochastic otherwise).
    q = query @ weight.T + bias
    k = key @ weight.T + bias
    qk = jnp.einsum("bqd,bkd->bqk", q, k)
    scaled = qk * scale_factor[None]           # (1, Sk) -> (1, 1, Sk)
    p = jax.nn.softmax(scaled, axis=-1)
    if dropout_p >= 1.0:
        p = jnp.zeros_like(p)
    return jnp.einsum("bqk,bkd->bqd", p, value)


if __name__ == "__main__":
    # Small shapes consistent with the module: scale_factor is (1, 16) so the
    # key sequence length must be 16. B=4 exercises the block_b=2 batched path.
    B, Sq, Sk = 4, 8, 16
    query_size, key_size, value_size = 32, 32, 32

    root = jax.random.PRNGKey(0)
    kq, kk, kv, ksf, kw, kb = jax.random.split(root, 6)

    query = jax.random.normal(kq, (B, Sq, query_size), dtype=jnp.float32)
    key = jax.random.normal(kk, (B, Sk, query_size), dtype=jnp.float32)
    value = jax.random.normal(kv, (B, Sk, value_size), dtype=jnp.float32)
    scale_factor = jax.random.uniform(ksf, (1, Sk), dtype=jnp.float32)

    # Deterministic nn.Linear(query_size, key_size) parameters.
    bound = 1.0 / (query_size ** 0.5)
    weight = jax.random.uniform(kw, (key_size, query_size),
                                minval=-bound, maxval=bound,
                                dtype=jnp.float32)
    bias = jax.random.uniform(kb, (key_size,),
                              minval=-bound, maxval=bound, dtype=jnp.float32)

    # Deterministic check at dropout_p = 0.0 (identity dropout).
    out0 = attention(query, key, value, scale_factor, weight, bias,
                     dropout_p=0.0)
    jax.block_until_ready(out0)
    ref0 = attention_ref(query, key, value, scale_factor, weight, bias, 0.0)
    assert jnp.allclose(out0, ref0, atol=2e-3, rtol=2e-3), \
        float(jnp.max(jnp.abs(out0 - ref0)))

    # The module's dropout_p constant is 1 -> training-mode dropout zeroes
    # everything; the kernel short-circuits this to a memset.
    out1 = attention(query, key, value, scale_factor, weight, bias,
                     dropout_p=1.0)
    jax.block_until_ready(out1)
    assert jnp.allclose(out1, jnp.zeros_like(out1))

    print("KERNEL_OK")
</pallas_src>

<mosaic_0001>
module attributes {stable_mosaic.version = 11 : i64} {
  func.func @_attn_kernel(%arg0: i32, %arg1: memref<2x8x32xf32, #tpu.memory_space<vmem>>, %arg2: memref<2x16x32xf32, #tpu.memory_space<vmem>>, %arg3: memref<2x16x32xf32, #tpu.memory_space<vmem>>, %arg4: memref<32x32xf32, #tpu.memory_space<vmem>>, %arg5: memref<1x32xf32, #tpu.memory_space<vmem>>, %arg6: memref<16x1xf32, #tpu.memory_space<vmem>>, %arg7: memref<2x8x32xf32, #tpu.memory_space<vmem>>) attributes {dimension_semantics = [#tpu.dimension_semantics<parallel>], iteration_bounds = array<i64: 2>, scalar_prefetch = 0 : i64, scratch_operands = 0 : i64, tpu.core_type = #tpu.core_type<tc>, window_params = [{transform_indices = @transform_0, window_bounds = array<i64: 2, 8, 32>}, {transform_indices = @transform_1, window_bounds = array<i64: 2, 16, 32>}, {transform_indices = @transform_2, window_bounds = array<i64: 2, 16, 32>}, {pipeline_mode = #tpu.pipeline_mode<synchronous>, transform_indices = @transform_3, window_bounds = array<i64: 32, 32>}, {pipeline_mode = #tpu.pipeline_mode<synchronous>, transform_indices = @transform_4, window_bounds = array<i64: 1, 32>}, {pipeline_mode = #tpu.pipeline_mode<synchronous>, transform_indices = @transform_5, window_bounds = array<i64: 16, 1>}, {transform_indices = @transform_6, window_bounds = array<i64: 2, 8, 32>}]} {
    %c0 = arith.constant 0 : index
    %c0_0 = arith.constant 0 : index
    %0 = vector.load %arg4[%c0, %c0_0] : memref<32x32xf32, #tpu.memory_space<vmem>>, vector<32x32xf32>
    %c0_1 = arith.constant 0 : index
    %c0_2 = arith.constant 0 : index
    %1 = vector.load %arg5[%c0_1, %c0_2] : memref<1x32xf32, #tpu.memory_space<vmem>>, vector<1x32xf32>
    %c0_3 = arith.constant 0 : index
    %c0_4 = arith.constant 0 : index
    %c0_5 = arith.constant 0 : index
    %2 = vector.load %arg1[%c0_3, %c0_4, %c0_5] : memref<2x8x32xf32, #tpu.memory_space<vmem>>, vector<2x8x32xf32>
    %3 = vector.shape_cast %2 : vector<2x8x32xf32> to vector<16x32xf32>
    %c0_6 = arith.constant 0 : index
    %c0_7 = arith.constant 0 : index
    %c0_8 = arith.constant 0 : index
    %4 = vector.load %arg2[%c0_6, %c0_7, %c0_8] : memref<2x16x32xf32, #tpu.memory_space<vmem>>, vector<2x16x32xf32>
    %5 = vector.shape_cast %4 : vector<2x16x32xf32> to vector<32x32xf32>
    %6 = tpu.concatenate %3, %5 in 0 : vector<16x32xf32>, vector<32x32xf32> -> vector<48x32xf32>
    %cst = arith.constant dense<0.000000e+00> : vector<48x32xf32>
    %7 = tpu.matmul %6, %0, %cst {dimension_numbers = #tpu.dot_dimension_numbers<[1], [0], [0], [1], [0, 0, 1, 1], [], []>} : vector<48x32xf32>, vector<32x32xf32>, vector<48x32xf32> -> vector<48x32xf32>
    %8 = vector.broadcast %1 : vector<1x32xf32> to vector<48x32xf32>
    %9 = arith.addf %7, %8 : vector<48x32xf32>
    %10 = vector.extract_strided_slice %9 {offsets = [0, 0], sizes = [16, 32], strides = [1, 1]} : vector<48x32xf32> to vector<16x32xf32>
    %11 = vector.shape_cast %10 : vector<16x32xf32> to vector<2x8x32xf32>
    %12 = vector.extract_strided_slice %9 {offsets = [16, 0], sizes = [32, 32], strides = [1, 1]} : vector<48x32xf32> to vector<32x32xf32>
    %13 = vector.shape_cast %12 : vector<32x32xf32> to vector<2x16x32xf32>
    %c0_9 = arith.constant 0 : index
    %c0_10 = arith.constant 0 : index
    %14 = vector.load %arg6[%c0_9, %c0_10] : memref<16x1xf32, #tpu.memory_space<vmem>>, vector<16x1xf32>
    %15 = vector.shape_cast %14 : vector<16x1xf32> to vector<1x16x1xf32>
    %16 = vector.broadcast %15 : vector<1x16x1xf32> to vector<2x16x32xf32>
    %17 = arith.mulf %13, %16 : vector<2x16x32xf32>
    "tpu.trace_start"() <{level = 10 : i32, message = "bqd,bkd->bqk"}> : () -> ()
    %cst_11 = arith.constant dense<0.000000e+00> : vector<2x8x16xf32>
    %18 = tpu.matmul %11, %17, %cst_11 {dimension_numbers = #tpu.dot_dimension_numbers<[2], [2], [1], [1], [0, 0, 0, 1, 1, 1], [0], [0]>} : vector<2x8x32xf32>, vector<2x16x32xf32>, vector<2x8x16xf32> -> vector<2x8x16xf32>
    "tpu.trace_stop"() : () -> ()
    %cst_12 = arith.constant dense<0xFF800000> : vector<2x8xf32>
    %19 = vector.multi_reduction <maximumf>, %18, %cst_12 [2] : vector<2x8x16xf32> to vector<2x8xf32>
    %20 = vector.shape_cast %19 : vector<2x8xf32> to vector<2x8x1xf32>
    %21 = vector.broadcast %20 : vector<2x8x1xf32> to vector<2x8x16xf32>
    %22 = arith.subf %18, %21 : vector<2x8x16xf32>
    %23 = math.exp %22 : vector<2x8x16xf32>
    %cst_13 = arith.constant dense<0.000000e+00> : vector<2x8xf32>
    %24 = vector.multi_reduction <add>, %23, %cst_13 [2] : vector<2x8x16xf32> to vector<2x8xf32>
    %25 = vector.shape_cast %24 : vector<2x8xf32> to vector<2x8x1xf32>
    %26 = tpu.reciprocal %25 {approx = true} : vector<2x8x1xf32> -> vector<2x8x1xf32>
    %27 = vector.broadcast %26 : vector<2x8x1xf32> to vector<2x8x16xf32>
    %28 = arith.mulf %23, %27 : vector<2x8x16xf32>
    %c0_14 = arith.constant 0 : index
    %c0_15 = arith.constant 0 : index
    %c0_16 = arith.constant 0 : index
    %29 = vector.load %arg3[%c0_14, %c0_15, %c0_16] : memref<2x16x32xf32, #tpu.memory_space<vmem>>, vector<2x16x32xf32>
    "tpu.trace_start"() <{level = 10 : i32, message = "bqk,bkd->bqd"}> : () -> ()
    %cst_17 = arith.constant dense<0.000000e+00> : vector<2x8x32xf32>
    %30 = tpu.matmul %28, %29, %cst_17 {dimension_numbers = #tpu.dot_dimension_numbers<[2], [1], [1], [2], [0, 0, 0, 1, 1, 2], [0], [0]>} : vector<2x8x16xf32>, vector<2x16x32xf32>, vector<2x8x32xf32> -> vector<2x8x32xf32>
    "tpu.trace_stop"() : () -> ()
    %c0_18 = arith.constant 0 : index
    %c0_19 = arith.constant 0 : index
    %c0_20 = arith.constant 0 : index
    %31 = vector.load %arg7[%c0_18, %c0_19, %c0_20] : memref<2x8x32xf32, #tpu.memory_space<vmem>>, vector<2x8x32xf32>
    tpu.vector_store %arg7[%c0_18, %c0_19, %c0_20], %30 {strides = array<i32>} : memref<2x8x32xf32, #tpu.memory_space<vmem>>, vector<2x8x32xf32>,
    return
  }
  func.func @transform_0(%arg0: i32) -> (i32, i32, i32) {
    %c0_i32 = arith.constant 0 : i32
    %c0_i32_0 = arith.constant 0 : i32
    %c0_i32_1 = arith.constant 0 : i32
    return %arg0, %c0_i32, %c0_i32_0 : i32, i32, i32
  }
  func.func @transform_1(%arg0: i32) -> (i32, i32, i32) {
    %c0_i32 = arith.constant 0 : i32
    %c0_i32_0 = arith.constant 0 : i32
    %c0_i32_1 = arith.constant 0 : i32
    return %arg0, %c0_i32, %c0_i32_0 : i32, i32, i32
  }
  func.func @transform_2(%arg0: i32) -> (i32, i32, i32) {
    %c0_i32 = arith.constant 0 : i32
    %c0_i32_0 = arith.constant 0 : i32
    %c0_i32_1 = arith.constant 0 : i32
    return %arg0, %c0_i32, %c0_i32_0 : i32, i32, i32
  }
  func.func @transform_3(%arg0: i32) -> (i32, i32) {
    %c0_i32 = arith.constant 0 : i32
    %c0_i32_0 = arith.constant 0 : i32
    %c0_i32_1 = arith.constant 0 : i32
    return %c0_i32, %c0_i32_0 : i32, i32
  }
  func.func @transform_4(%arg0: i32) -> (i32, i32) {
    %c0_i32 = arith.constant 0 : i32
    %c0_i32_0 = arith.constant 0 : i32
    %c0_i32_1 = arith.constant 0 : i32
    return %c0_i32, %c0_i32_0 : i32, i32
  }
  func.func @transform_5(%arg0: i32) -> (i32, i32) {
    %c0_i32 = arith.constant 0 : i32
    %c0_i32_0 = arith.constant 0 : i32
    %c0_i32_1 = arith.constant 0 : i32
    return %c0_i32, %c0_i32_0 : i32, i32
  }
  func.func @transform_6(%arg0: i32) -> (i32, i32, i32) {
    %c0_i32 = arith.constant 0 : i32
    %c0_i32_0 = arith.constant 0 : i32
    %c0_i32_1 = arith.constant 0 : i32
    return %arg0, %c0_i32, %c0_i32_0 : i32, i32, i32
  }
}

</mosaic_0001>

<bundles_post_ra>
// kernel: tpu_custom_call.1
= control target key start
LH: loop header
LB: loop body
LE: loop exit
PB: predicated region body
PF: predicated region fallthrough
CT: control target
= control target key end

     0   :  { %s1754_s0 = inlined_call_operand.hbm [shape: f32[4,8,32], index: 0, kind: input, shape index: {}]   ;;  %s1755_s1 = inlined_call_operand.hbm [shape: f32[4,16,32], index: 1, kind: input, shape index: {}]   ;;  %s1756_s2 = inlined_call_operand.hbm [shape: f32[4,16,32], index: 2, kind: input, shape index: {}]   ;;  %s1757_s3 = inlined_call_operand.hbm [shape: f32[32,32], index: 3, kind: input, shape index: {}]   ;;  %s1758_s4 = inlined_call_operand.vmem [shape: f32[1,32], index: 4, kind: input, shape index: {}]   ;;  %s1759_s5 = inlined_call_operand.vmem [shape: f32[16,1], index: 5, kind: input, shape index: {}]   ;;  %s1760_s6 = inlined_call_operand.hbm [shape: f32[4,8,32], index: 6, kind: output, shape index: {}]  }
   0x1   :  { %1776 = sst [smem:[#allocation21_spill]] %s1755_s1 }
   0x2   :  { %11 = vsyncpa [#allocation3], 0 }
   0x3   :  { %13 = vsyncpa [#allocation3 + $0x1], 0 }
   0x4   :  { %14 = vsyncpa [#allocation6], 0 }
   0x5   :  { %16 = vsyncpa [#allocation6 + $0x1], 0 }
   0x6   :  { %17 = vsyncpa [#allocation9], 0 }
   0x7   :  { %18 = vsyncpa [#allocation4], 0 }
   0x8   :  { %20 = vsyncpa [#allocation4 + $0x1], 0  ;;  %s1416_s21 = smov 0   ;;  %s1418_s22 = smov 0  }
   0x9   :  { %s1420_s23 = smov 0   ;;  %s1422_s24 = smov 0  }
   0xa LB: > { %1777 = sst [smem:[#allocation15_spill]] %s1355_s21  ;;  %s1437_s25 = sadd.s32 1, %s1367_s24   ;;  %s1367_s24 = sphi %s1422_s24, %s1804_s24   ;;  %s1363_s23 = sphi %s1420_s23, %s1806_s23   ;;  %s1359_s22 = sphi %s1418_s22, %s1808_s22   ;;  %s1355_s21 = sphi %s1416_s21, %s1807_s21  }
   0xb   : > { %1778 = sst [smem:[#allocation16_spill]] %s1363_s23  ;;  %s33_s26 = sadd.s32 1, %s1363_s23 }
   0xc   : > { %1779 = sst [smem:[#allocation17_spill]] %s1367_s24  ;;  %s30_s27 = ssub.s32 %s1367_s24, %s1437_s25 }
   0xd   : > { %1780 = sst [smem:[#allocation18_spill]] %s1437_s25  ;;  %p1761_p0 = scmp.ne.s32.totalorder %s1363_s23, %s1359_s22 }
   0xe   : > { %p31_p1 = scmp.eq.s32.totalorder %s30_s27, 0  ;;  %p41_p2 = scmp.eq.s32.totalorder %s1367_s24, 0 }
   0xf   : > { %p1133_p5 = scmp.lt.s32.totalorder %s1367_s24, 2  ;;  %s1454_s29 = sand.u32 1, %s1363_s23  }
  0x10   : > { %s1446_s28 = scalar_select %p31_p1, %s1363_s23, %s33_s26  }
  0x11   : > { %p42_p3 = por %p41_p2, %p1761_p0  ;;  %s251_s30 = sand.u32 1, %s1367_s24  }
  0x12   : > { %1781 = sst [smem:[#allocation19_spill]] %s1446_s28  ;;  %s995_s7 = sshll.u32 %s1454_s29, 5 }
  0x13   : > { %p1458_p6 = pnand %p1133_p5, %p42_p3  ;;  %s1031_s9 = sshll.u32 %s1367_s24, 9 }
  0x14   : > { %s1783_s1 = sld [smem:[#allocation21_spill]]  ;;  %s255_s13 = scalar_lea.vmem [#allocation5], %s995_s7 }
  0x15   : > { %s263_s14 = sshll.u32 %s255_s13, 4  ;;  %s1474_s15 = scalar_lea.sflag [#allocation6], %s251_s30  ;;  %s1472_s14 = int_to_ptr.vmem [resolvable:$true] %s263_s14 }
  0x16   : > { %p1480_p8 = pneg %p1458_p6 }
  0x1a   : > { %s1468_s12 = scalar_lea.hbm %s1783_s1, %s1031_s9  ;;  %s1190_s20 = scalar_lea.hbm %s1783_s1, 1024 }
  0x1b   : > { %s1185_s16 = scalar_lea.hbm %s1468_s12, 512  ;;  %p1191_p11 = scmp.lt.s32.totalorder %s1468_s12, %s1783_s1 }
  0x1c   : > { %p1186_p7 = scmp.ne.s32.totalorder %s1468_s12, %s1185_s16  ;;  %p1192_p12 = scmp.lt.s32.totalorder %s1190_s20, %s1185_s16 }
  0x1e   : > { %p1188_p9 = pnand %p1480_p8, %p1186_p7  ;;  %p1193_p13 = por %p1192_p12, %p1191_p11 }
  0x20   : > { %p1189_p10 = pneg %p1188_p9 }
  0x22   : > { %p1194_p1 = pnand %p1193_p13, %p1189_p10 }
  0x24   : > { %1197 = shalt.err (!%p1194_p1)
}
  0x25   : > { %s1198_s30 = scalar_lea.vmem %s1472_s14, 512  ;;  %s1369_s10 = smov [#allocation5]  }
  0x26   : > { %p1199_p2 = scmp.ne.s32.totalorder %s1472_s14, %s1198_s30  ;;  %s1203_s11 = sshll.u32 %s1369_s10, 4  ;;  %s1204_s11 = int_to_ptr.vmem [resolvable:$false] %s1203_s11 }
  0x27   : > { %s1205_s13 = scalar_lea.vmem %s1204_s11, 1024  ;;  %p1206_p7 = scmp.lt.s32.totalorder %s1472_s14, %s1204_s11 }
  0x28   : > { %p1201_p3 = pnand %p1199_p2, %p1480_p8  ;;  %p1207_p9 = scmp.lt.s32.totalorder %s1205_s13, %s1198_s30 }
  0x2a   : > { %p1202_p5 = pneg %p1201_p3  ;;  %p1208_p4 = por %p1207_p9, %p1206_p7 }
  0x2c   : > { %p1209_p0 = pnand %p1208_p4, %p1202_p5 }
  0x2e   : > { %1212 = shalt.err (!%p1209_p0)
}
  0x2f   : > { %s1762_s16 = smov 128   ;;  %s1764_s18 = smov 8  }
  0x30   : > { %1124 = dma.hbm_to_vmem [thread:$0]  (!%p1458_p6), %s1468_s12, 512, %s1472_s14, %s1474_s15, %s1762_s16, %s1762_s16, %s1764_s18  }
  0x31   : > { %s1511_s26 = scalar_lea.hbm %s1756_s2, %s1031_s9  ;;  %s1514_s27 = sadd.s32 4294967295, %s1367_s24  }
  0x32   : > { %s988_s30 = sadd.s32 4294967294, %s1367_s24   ;;  %p46_p0 = scmp.ne.s32.totalorder %s1359_s22, %s1355_s21 }
  0x33   : > { %p1767_p4 = scmp.eq.s32.totalorder %s1514_s27, 0  ;;  %p185_p10 = scmp.eq.s32.totalorder %s1514_s27, 1 }
  0x34   : > { %p191_p11 = scmp.eq.s32.totalorder %s988_s30, 1  ;;  %p989_p13 = scmp.ge.s32.totalorder %s1367_s24, 1 }
  0x35   : > { %p1523_p12 = por %p1767_p4, %p46_p0  ;;  %p1786_p1 = scmp.ne.s32.totalorder %s1363_s23, %s1359_s22 }
  0x36   : > { %p1535_p3 = por %p191_p11, %p46_p0  ;;  %p198_p5 = scmp.lt.s32.totalorder %s1367_s24, 3 }
  0x37   : > { %s1785_s12 = scalar_select %p1523_p12, 1, 0 }
  0x38   : > { %p1531_p2 = por %p185_p10, %p1786_p1  ;;  %s277_s10 = scalar_lea.vmem [#allocation7], %s995_s7 }
  0x39   : > { %s1788_s14 = scalar_select %p1535_p3, 1, 0 }
  0x3a   : > { %s1787_s9 = scalar_select %p1531_p2, 1, 0 }
  0x3b   : > { %1789 = sst [smem:[#allocation20_spill]] %s1788_s14  ;;  %s285_s11 = sshll.u32 %s277_s10, 4  ;;  %s1563_s11 = int_to_ptr.vmem [resolvable:$true] %s285_s11 }
  0x3c   : > { %p1542_p7 = pnand %p989_p13, %p198_p5  ;;  %s1372_s19 = smov [#allocation8]  }
  0x3d   : > { %s210_s20 = sshll.u32 %s1372_s19, 4  ;;  %s992_s30 = sshll.u32 %s1454_s29, 4  ;;  %s211_s20 = int_to_ptr.vmem [resolvable:$true] %s210_s20 }
  0x3e   : > { %s1790_s13 = scalar_select %p1542_p7, 1, 0 }
  0x3f   : > { %p1114_p9 = pneg %p1542_p7  ;;  %s1029_s16 = sshll.u32 %s1367_s24, 8 }
  0x40   : > { %s234_s18 = scalar_lea.vmem [#allocation2], %s992_s30  ;;  %s1559_s23 = scalar_lea.hbm %s1754_s0, %s1029_s16 }
  0x41   : > { %s241_s1 = sshll.u32 %s234_s18, 4  ;;  %p1552_p0 = pnand %p1114_p9, %p1767_p4  ;;  %s1561_s1 = int_to_ptr.vmem [resolvable:$true] %s241_s1 }
  0x42   : > { %s1224_s19 = scalar_lea.vmem %s211_s20, 512  ;;  %p1232_p5 = scmp.lt.s32.totalorder %s211_s20, %s211_s20 }
  0x43   : > { %p1215_p10 = pneg %p1552_p0  ;;  %p1225_p11 = scmp.ne.s32.totalorder %s211_s20, %s1224_s19 }
  0x44   : > { %p1233_p9 = scmp.lt.s32.totalorder %s1224_s19, %s1224_s19 }
  0x45   : > { %p1227_p13 = pnand %p1225_p11, %p1215_p10 }
  0x46   : > { %p1234_p4 = por %p1233_p9, %p1232_p5 }
  0x47   : > { %p1228_p1 = pneg %p1227_p13 }
  0x49   : > { %p1235_p3 = pnand %p1234_p4, %p1228_p1 }
  0x4b   : > { %1238 = shalt.err (!%p1235_p3)
}
  0x4c   : > { %s1792_s18 = smov 8   ;;  %s1793_s16 = smov 128  }
  0x4d   : > { %1117 = dma.hbm_to_vmem [thread:$0]  (!%p1552_p0), %s1757_s3, 512, %s211_s20, [#allocation9], %s1793_s16, %s1793_s16, %s1792_s18  }
  0x4e   : > { %s231_s10 = scalar_lea.sflag [#allocation3], %s1454_s29  ;;  %s1239_s25 = scalar_lea.hbm %s1559_s23, 256 }
  0x4f   : > { %p1240_p10 = scmp.ne.s32.totalorder %s1559_s23, %s1239_s25  ;;  %s1244_s24 = scalar_lea.hbm %s1754_s0, 512 }
  0x50   : > { %p1245_p11 = scmp.lt.s32.totalorder %s1559_s23, %s1754_s0  ;;  %p1246_p13 = scmp.lt.s32.totalorder %s1244_s24, %s1239_s25 }
  0x51   : > { %p1242_p4 = pnand %p1240_p10, %p1480_p8 }
  0x52   : > { %p1247_p1 = por %p1246_p13, %p1245_p11 }
  0x53   : > { %p1243_p3 = pneg %p1242_p4 }
  0x55   : > { %p1248_p5 = pnand %p1247_p1, %p1243_p3 }
  0x57   : > { %1251 = shalt.err (!%p1248_p5)
}
  0x58   : > { %s1252_s29 = scalar_lea.vmem %s1561_s1, 256  ;;  %s1373_s20 = smov [#allocation2]  }
  0x59   : > { %p1253_p0 = scmp.ne.s32.totalorder %s1561_s1, %s1252_s29  ;;  %s1257_s30 = sshll.u32 %s1373_s20, 4  ;;  %s1258_s30 = int_to_ptr.vmem [resolvable:$false] %s1257_s30 }
  0x5a   : > { %s1259_s7 = scalar_lea.vmem %s1258_s30, 512  ;;  %p1260_p4 = scmp.lt.s32.totalorder %s1561_s1, %s1258_s30 }
  0x5b   : > { %p1255_p9 = pnand %p1253_p0, %p1480_p8  ;;  %p1261_p2 = scmp.lt.s32.totalorder %s1259_s7, %s1252_s29 }
  0x5d   : > { %p1256_p10 = pneg %p1255_p9  ;;  %p1262_p12 = por %p1261_p2, %p1260_p4 }
  0x5f   : > { %p1263_p7 = pnand %p1262_p12, %p1256_p10 }
  0x61   : > { %1266 = shalt.err (!%p1263_p7)
}
  0x62   : > { %1121 = dma.hbm_to_vmem [thread:$0]  (!%p1458_p6), %s1559_s23, 256, %s1561_s1, %s231_s10, %s1793_s16, %s1793_s16, %s1792_s18  }
  0x63   : > { %s1267_s21 = scalar_lea.hbm %s1511_s26, 512  ;;  %s1272_s14 = scalar_lea.hbm %s1756_s2, 1024 }
  0x64   : > { %p1268_p3 = scmp.ne.s32.totalorder %s1511_s26, %s1267_s21  ;;  %p1273_p12 = scmp.lt.s32.totalorder %s1511_s26, %s1756_s2 }
  0x65   : > { %p1274_p2 = scmp.lt.s32.totalorder %s1272_s14, %s1267_s21 }
  0x66   : > { %p1270_p11 = pnand %p1268_p3, %p1480_p8 }
  0x67   : > { %p1275_p7 = por %p1274_p2, %p1273_p12 }
  0x68   : > { %p1271_p13 = pneg %p1270_p11 }
  0x6a   : > { %p1276_p1 = pnand %p1275_p7, %p1271_p13 }
  0x6c   : > { %1279 = shalt.err (!%p1276_p1)
}
  0x6d   : > { %s1280_s1 = scalar_lea.vmem %s1563_s11, 512  ;;  %s1374_s23 = smov [#allocation7]  }
  0x6e   : > { %p1281_p5 = scmp.ne.s32.totalorder %s1563_s11, %s1280_s1  ;;  %s1285_s10 = sshll.u32 %s1374_s23, 4  ;;  %s1286_s10 = int_to_ptr.vmem [resolvable:$false] %s1285_s10 }
  0x6f   : > { %s1287_s29 = scalar_lea.vmem %s1286_s10, 1024  ;;  %p1288_p10 = scmp.lt.s32.totalorder %s1563_s11, %s1286_s10 }
  0x70   : > { %p1283_p0 = pnand %p1281_p5, %p1480_p8  ;;  %p1289_p4 = scmp.lt.s32.totalorder %s1287_s29, %s1280_s1 }
  0x72   : > { %p1284_p9 = pneg %p1283_p0  ;;  %p1290_p3 = por %p1289_p4, %p1288_p10 }
  0x74   : > { %p1291_p11 = pnand %p1290_p3, %p1284_p9 }
  0x76   : > { %1294 = shalt.err (!%p1291_p11)
}
  0x77   : > { %1127 = dma.hbm_to_vmem [thread:$0]  (!%p1458_p6), %s1511_s26, 512, %s1563_s11, %s1474_s15, %s1793_s16, %s1793_s16, %s1792_s18  }
  0x78   : > { %p1794_p8 = scmp.ne.s32.totalorder %s1790_s13, 0 }
  0x79   : > { %s1626_s17 = sand.u32 (!%p1794_p8), 1, %s1359_s22   ;;  %p1795_p13 = scmp.ne.s32.totalorder (!%p1794_p8), %s1785_s12, 0 }
  0x7a   : > { %297 = sbr.rel (%p1794_p8) target bundleno = 1072 (0x430), region = 44  ;;  %s1004_s20 = sshll.u32 (!%p1794_p8), %s1626_s17, 4 }
  0x7b   : > { %s300_s30 = scalar_lea.sflag (!%p1794_p8), [#allocation3], %s1626_s17  ;;  %s303_s8 = scalar_lea.vmem (!%p1794_p8), [#allocation2], %s1004_s20 }
  0x7f   : > { %1338 = dma.done.wait (%p1795_p13), %s300_s30, 256  }
  0x80   : > { %1340 = vsyncadd (%p1795_p13), %s300_s30, 4294967040  ;;  %s308_s15 = sand.u32 1, %s1514_s27   ;;  %s1005_s26 = sshll.u32 %s1626_s17, 5 }
  0x81   : > { %s309_s11 = scalar_lea.sflag [#allocation6], %s308_s15  ;;  %s1638_s13 = scalar_lea.vmem [#allocation5], %s1005_s26 }
  0x82   : > { %1342 = dma.done.wait (%p1795_p13), %s309_s11, 1024  }
  0x83   : > { %1344 = vsyncadd (%p1795_p13), %s309_s11, 4294966272  ;;  %s1644_s18 = scalar_lea.vmem [#allocation7], %s1005_s26  ;;  %p1796_p6 = scmp.eq.s32.totalorder %s1514_s27, 0 }
  0x85   : > { %1346 = dma.done.wait (%p1796_p6), [#allocation9], 512   ;;  %p1797_p12 = pmov %p1796_p6 }
  0x86   : > { %v1375_v0 = vmov 0   ;;  %vm385_vm0 = vcmask 261120   ;;  %v371_v1 = vld [vmem:[#allocation8 + $0x18] sm:$0xff]  ;;  %v370_v2 = vld [vmem:[#allocation8 + $0x10] sm:$0xff]  ;;  %v369_v4 = vld [vmem:[#allocation8 + $0x8] sm:$0xff]  ;;  %v1376_v13 = vmov 0.0  }
  0x87   : > { %1348 = vsyncadd (%p1797_p12), [#allocation9], 4294966784  ;;  %1176 = vset.pattern.permute.xlu0 %v1375_v0  ;;  %1057 = vmatprep.subr.mxu0 %v371_v1  ;;  %v373_v3 = vld [vmem:[%s303_s8] sm:$0xff]  ;;  %v500_v5 = vld [vmem:[%s1759_s5 + $0x8] sm:$0xff]  ;;  %vm1377_vm1 = vmmov 0   ;;  %vm673_vm2 = vcmask 130048  }
  0x88   : > { %1058 = vmatpush3.msra.mxu0 %v371_v1  ;;  %1065 = vmatprep.mubr.msk.f32.mxu0 %vm385_vm0, %v373_v3  ;;  %v368_v6 = vld [vmem:[#allocation8] sm:$0xff]  ;;  %v374_v8 = vld [vmem:[%s303_s8 + $0x8] sm:$0xff]  ;;  %v377_v11 = vld [vmem:[%s1638_s13 + $0x10] sm:$0xff]  ;;  %s363_s14 = scalar_lea.vmem [#allocation10], %s1004_s20  ;;  %s1034_s28 = sshll.u32 %s1514_s27, 8 }
  0x89   : > { %1059 = vmatprep.subr.mxu0 %v370_v2  ;;  %508 = vperm.xlu0 %1176, %v500_v5   ;;  %v499_v7 = vld [vmem:[%s1759_s5] sm:$0xff]  ;;  %v376_v10 = vld [vmem:[%s1638_s13 + $0x8] sm:$0xff]  ;;  %v378_v12 = vld [vmem:[%s1638_s13 + $0x18] sm:$0xff]  ;;  %s862_s19 = sshll.u32 %s363_s14, 4  ;;  %s1710_s10 = scalar_lea.hbm %s1760_s6, %s1034_s28  ;;  %s1705_s19 = int_to_ptr.vmem [resolvable:$true] %s862_s19 }
  0x8a   : > { %1060 = vmatpush3.msra.mxu0 %v370_v2  ;;  %v375_v9 = vld [vmem:[%s1638_s13] sm:$0xff]  ;;  %1074 = vmatprep.subr.mxu1 %v1376_v13  ;;  %v697_v49 = vld [vmem:[%s1644_s18 + $0x8] sm:$0xff]  ;;  %v699_v51 = vld [vmem:[%s1644_s18 + $0x18] sm:$0xff]  ;;  %s849_s29 = scalar_lea.sflag [#allocation4], %s1626_s17  ;;  %s1295_s20 = scalar_lea.vmem %s1705_s19, 256 }
  0x8b   : > { %1061 = vmatprep.subr.mxu0 %v369_v4  ;;  %1078 = vmatprep.mubr.msk.f32.mxu1 %vm1377_vm1, %v1376_v13  ;;  %v1009_v16 = vld [vmem:[%s1758_s4] ss:$0 sm:$0xff]  ;;  %v698_v52 = vld [vmem:[%s1644_s18 + $0x10] sm:$0xff]  ;;  %p1296_p2 = scmp.ne.s32.totalorder %s1705_s19, %s1295_s20  ;;  %p1798_p7 = scmp.ne.s32.totalorder %s1787_s9, 0 }
  0x8c   : > { %1062 = vmatpush3.msra.mxu0 %v369_v4  ;;  %v696_v50 = vld [vmem:[%s1644_s18] sm:$0xff]  ;;  %s1378_s27 = smov [#allocation10]  }
  0x8d   : > { %1063 = vmatprep.subr.mxu0 %v368_v6  ;;  %503 = vperm.xlu0 %1176, %v499_v7   ;;  %p1297_p1 = pnand %p1296_p2, %p1798_p7  ;;  %s1299_s30 = sshll.u32 %s1378_s27, 4  ;;  %s1300_s30 = int_to_ptr.vmem [resolvable:$false] %s1299_s30 }
  0x8e   : > { %1064 = vmatpush3.msra.mxu0 %v368_v6  ;;  %s1301_s8 = scalar_lea.vmem %s1300_s30, 512  ;;  %p1302_p0 = scmp.lt.s32.totalorder %s1705_s19, %s1300_s30 }
  0x8f   : > { %1066 = vmatmul.mubr.msk.f32.vlgmr.msra.gmra.mxu0 %vm385_vm0, %v374_v8  ;;  %1088 = vmatprep.subr.mxu0 %v1376_v13  ;;  %p1298_p5 = pneg %p1297_p1  ;;  %p1303_p9 = scmp.lt.s32.totalorder %s1301_s8, %s1295_s20 }
  0x90   : > { %1068 = vmatprep.mubr.msk.f32.mxu0 %vm385_vm0, %v375_v9  ;;  %1089 = vmatpush3.msra.mxu0 %v697_v49 }
  0x91   : > { %1090 = vmatprep.subr.mxu0 %v1376_v13  ;;  %p1304_p10 = por %p1303_p9, %p1302_p0 }
  0x92   : > { %1091 = vmatpush3.msra.mxu0 %v696_v50 }
  0x93   : > { %1069 = vmatmul.mubr.msk.f32.gmra.mxu0 %vm385_vm0, %v376_v10  ;;  %p1305_p4 = pnand %p1304_p10, %p1298_p5 }
  0x94   : > { %1071 = vmatprep.mubr.msk.f32.mxu0 %vm385_vm0, %v377_v11 }
  0x97   : > { %1072 = vmatmul.mubr.msk.f32.gmra.mxu0 %vm385_vm0, %v378_v12 }
  0x98   : > { %1092 = vmatprep.mubr.msk.f32.mxu0 %vm1377_vm1, %v1376_v13 }
 0x104   : > { %v509_v17 = vpop.permute.xlu0 %508 }
 0x108   : > { %v504_v24 = vpop.permute.xlu0 %503 }
 0x14f   : > { %v1067_v14 = vpop.f32.mrf.mxu0 }
 0x150   : > { %v476_v32 = vadd.f32 %v1067_v14, %v1009_v16 }
 0x151   : > { %v470_v15 = vpop.f32.mrf.mxu0 }
 0x152   : > { %v471_v28 = vadd.f32 %v1009_v16, %v470_v15 }
 0x153   : > { %v1070_v18 = vpop.f32.mrf.mxu0 }
 0x154   : > { %v486_v19 = vadd.f32 %v1070_v18, %v1009_v16 }
 0x155   : > { %v480_v20 = vpop.f32.mrf.mxu0 }
 0x156   : > { %v512_v21 = vmul.f32 %v509_v17, %v486_v19  ;;  %v481_v22 = vadd.f32 %v1009_v16, %v480_v20 }
 0x157   : > { %v1073_v23 = vpop.f32.mrf.mxu0 }
 0x158   : > { %1075 = vmatpush3.xpose.msk.msra.mxu1 %vm385_vm0, %v512_v21  ;;  %v511_v25 = vmul.f32 %v504_v24, %v481_v22  ;;  %v496_v26 = vadd.f32 %v1073_v23, %v1009_v16 }
 0x159   : > { %1076 = vmatprep.subr.mxu1 %v1376_v13  ;;  %v490_v27 = vpop.f32.mrf.mxu0 }
 0x15a   : > { %v514_v29 = vmul.f32 %v509_v17, %v496_v26  ;;  %v491_v30 = vadd.f32 %v1009_v16, %v490_v27 }
 0x15c   : > { %1077 = vmatpush3.xpose.msk.msra.mxu1 %vm385_vm0, %v511_v25  ;;  %v513_v31 = vmul.f32 %v504_v24, %v491_v30 }
 0x15d   : > { %1081 = vmatprep.subr.mxu1 %v1376_v13 }
 0x15f   : > { %1079 = vmatmul.mubr.msk.f32.vlgmr.msra.gmra.mxu1 %vm385_vm0, %v471_v28 }
 0x160   : > { %1082 = vmatpush3.xpose.msk.msra.mxu1 %vm385_vm0, %v514_v29  ;;  %1085 = vmatprep.mubr.msk.f32.mxu1 %vm1377_vm1, %v1376_v13 }
 0x161   : > { %1083 = vmatprep.subr.mxu1 %v1376_v13 }
 0x164   : > { %1084 = vmatpush3.xpose.msk.msra.mxu1 %vm385_vm0, %v513_v31 }
 0x165   : > { %1095 = vmatprep.subr.mxu1 %v1376_v13 }
 0x167   : > { %1086 = vmatmul.mubr.msk.f32.vlgmr.msra.gmra.mxu1 %vm385_vm0, %v476_v32 }
 0x168   : > { %1099 = vmatprep.mubr.msk.f32.mxu1 %vm1377_vm1, %v1376_v13  ;;  %1096 = vmatpush3.msra.mxu1 %v699_v51 }
 0x169   : > { %1097 = vmatprep.subr.mxu1 %v1376_v13 }
 0x16a   : > { %1098 = vmatpush3.msra.mxu1 %v698_v52 }
 0x21f   : > { %v590_v33 = vpop.f32.mrf.mxu1 }
 0x220   : > { %v674_v34 = vsel %vm673_vm2, %v590_v33, -inf }
 0x221   : > { %675 = vmax.xlane.f32.xlu1 %v674_v34  ;;  %v1080_v35 = vpop.f32.mrf.mxu1 }
 0x227   : > { %v669_v36 = vpop.f32.mrf.mxu1 }
 0x228   : > { %v677_v37 = vsel %vm673_vm2, %v669_v36, -inf }
 0x229   : > { %678 = vmax.xlane.f32.xlu1 %v677_v37  ;;  %v1087_v38 = vpop.f32.mrf.mxu1 }
 0x2aa   : > { %v676_v39 = vpop.xlane.xlu1 %675 }
 0x2ab   : > { %v680_v40 = vsub.f32 %v590_v33, %v676_v39 }
 0x2ad   : > { %v682_v41 = vmul.f32 1.442695, %v680_v40 }
 0x2af   : > { %1177 = vpow2.f32 %v682_v41 }
 0x2b2   : > { %v679_v42 = vpop.xlane.xlu1 %678 }
 0x2b3   : > { %v681_v43 = vsub.f32 %v669_v36, %v679_v42 }
 0x2b5   : > { %v684_v44 = vmul.f32 1.442695, %v681_v43 }
 0x2b7   : > { %1179 = vpow2.f32 %v684_v44 }
 0x2bc   : > { %v1178_v45 = vpop.eup %1177 }
 0x2bd   : > { %v686_v46 = vsel %vm673_vm2, %v1178_v45, 0.0 }
 0x2be   : > { %687 = vadd.xlane.f32.xlu0 %v686_v46 }
 0x2c4   : > { %v1180_v47 = vpop.eup %1179 }
 0x2c5   : > { %v689_v48 = vsel %vm673_vm2, %v1180_v47, 0.0 }
 0x2c6   : > { %690 = vadd.xlane.f32.xlu1 %v689_v48 }
 0x347   : > { %v688_v53 = vpop.xlane.xlu0 %687 }
 0x348   : > { %1181 = vrcp.f32 %v688_v53 }
 0x34f   : > { %v691_v54 = vpop.xlane.xlu1 %690 }
 0x350   : > { %1183 = vrcp.f32 %v691_v54 }
 0x355   : > { %v1182_v55 = vpop.eup %1181 }
 0x356   : > { %v694_v56 = vmul.f32 %v1182_v55, %v1178_v45 }
 0x358   : > { %1093 = vmatmul.mubr.msk.f32.vlgmr.msra.gmra.mxu0 %vm673_vm2, %v694_v56 }
 0x35d   : > { %v1184_v57 = vpop.eup %1183 }
 0x35e   : > { %v695_v58 = vmul.f32 %v1184_v57, %v1180_v47 }
 0x360   : > { %1100 = vmatmul.mubr.msk.f32.vlgmr.msra.gmra.mxu1 %vm673_vm2, %v695_v58 }
 0x418   : > { %v769_v59 = vpop.f32.mrf.mxu0 }
 0x419   : > { %846 = vst.msk [vmem:[%s363_s14] sm:$0xff] %vm385_vm0, %v769_v59 }
 0x41a   : > { %v1094_v60 = vpop.f32.mrf.mxu0 }
 0x420   : > { %v842_v61 = vpop.f32.mrf.mxu1 }
 0x421   : > { %847 = vst.msk [vmem:[%s363_s14 + $0x8] sm:$0xff] %vm385_vm0, %v842_v61 }
 0x422   : > { %v1101_v62 = vpop.f32.mrf.mxu1 }
 0x423   : > { %1308 = shalt.err (!%p1305_p4)
}
 0x424   : > { %s1309_s15 = scalar_lea.hbm %s1710_s10, 256  ;;  %s1313_s13 = scalar_lea.hbm %s1760_s6, 512 }
 0x425   : > { %p1310_p3 = scmp.ne.s32.totalorder %s1710_s10, %s1309_s15  ;;  %p1314_p13 = scmp.lt.s32.totalorder %s1710_s10, %s1760_s6 }
 0x426   : > { %p1315_p6 = scmp.lt.s32.totalorder %s1313_s13, %s1309_s15 }
 0x427   : > { %p1311_p11 = pnand %p1310_p3, %p1798_p7 }
 0x428   : > { %p1316_p12 = por %p1315_p6, %p1314_p13 }
 0x429   : > { %p1312_p8 = pneg %p1311_p11 }
 0x42b   : > { %p1317_p2 = pnand %p1316_p12, %p1312_p8 }
 0x42d   : > { %1320 = shalt.err (!%p1317_p2)
}
 0x42e   : > { %s1379_s16 = smov 128   ;;  %s1380_s7 = smov 8  }
 0x42f   : > { %1112 = dma.vmem_to_hbm [thread:$0]  (%p1798_p7), %s1705_s19, 256, %s1710_s10, %s849_s29, %s1379_s16, %s1379_s16, %s1380_s7  }
 0x430 PF: > { %s1799_s21 = sld [smem:[#allocation15_spill]] }
 0x431   : > { %s1800_s24 = sld [smem:[#allocation20_spill]] }
 0x432   : > { %s1801_s25 = sld [smem:[#allocation17_spill]] }
 0x436   : > { %s877_s14 = sand.u32 1, %s1799_s21  }
 0x437   : > { %p1802_p1 = scmp.ne.s32.totalorder %s1800_s24, 0  ;;  %s878_s28 = scalar_lea.sflag [#allocation4], %s877_s14 }
 0x438   : > { %p1803_p5 = scmp.ge.s32.totalorder %s1801_s25, 2 }
 0x43a   : > { %p1129_p0 = pnand %p1803_p5, %p1802_p1 }
 0x43c   : > { %p1130_p9 = pneg %p1129_p0 }
 0x43e   : > { %1350 = dma.done.wait (%p1130_p9), %s878_s28, 256  }
 0x43f   : > { %1352 = vsyncadd (%p1130_p9), %s878_s28, 4294967040  ;;  %s1804_s24 = sld [smem:[#allocation18_spill]]  ;;  %s1807_s21 = smov %s1359_s22 }
 0x440   : > { %s1805_s1 = sld [smem:[#allocation16_spill]] }
 0x441   : > { %s1806_s23 = sld [smem:[#allocation19_spill]] }
 0x445   : > { %p23_p10 = scmp.ge.s32.totalorder %s1804_s24, 4  }
 0x446   : > { %s1808_s22 = smov %s1805_s1 }
 0x447   :  { %25 = sbr.rel (!%p23_p10) target bundleno = 10 (0xa), region = 117 }
 0x44c   :  { %883 = vsyncpa [#allocation3], 1 }
 0x44d   :  { %885 = vsyncpa [#allocation3 + $0x1], 1 }
 0x44e   :  { %886 = vsyncpa [#allocation6], 1 }
 0x44f   :  { %888 = vsyncpa [#allocation6 + $0x1], 1 }
 0x450   :  { %889 = vsyncpa [#allocation9], 1 }
 0x451   :  { %890 = vsyncpa [#allocation4], 1 }
 0x452   :  { %892 = vsyncpa [#allocation4 + $0x1], 1 }

</bundles_post_ra>
